<compile_context>
chip_gen: v5e
topology: v5e:2x2
jax: 0.10.0
libtpu: 0.0.40
codegen_flags: <defaults>
</compile_context>

<pallas_src>
import jax
import jax.numpy as jnp
from jax.experimental import pallas as pl
from jax.experimental.pallas import tpu as pltpu

_MIB = 1024 * 1024


def _swiglu_kernel(l_ref, r_ref, o_ref):
    # l_ref, r_ref, o_ref: (TILE_R, TILE_N) VMEM tiles.
    left = l_ref[...].astype(jnp.float32)
    right = r_ref[...].astype(jnp.float32)
    # silu(x) = x*sigmoid(x) = 0.5*x*(1 + tanh(x/2)): one EUP op per element.
    silu = 0.5 * left * (1.0 + jnp.tanh(0.5 * left))
    o_ref[...] = (silu * right).astype(o_ref.dtype)


def _vmem_capacity_bytes():
    try:
        return int(pltpu.get_tpu_info().vmem_capacity_bytes)
    except Exception:
        return 64 * _MIB  # conservative default (v7x per-TensorCore)


def swiglu(x, *, tile_rows=1024, max_feature_tile=2048):
    """SwiGLU over the last axis: silu(x[..., :H]) * x[..., H:]."""
    orig_shape = x.shape
    two_h = orig_shape[-1]
    assert two_h % 2 == 0, "last dim must be even for SwiGLU"
    h = two_h // 2

    if h % 128 != 0:
        # TODO(synk): rare non-lane-aligned H -> defer to XLA per perf review
        # (a Pallas path here would be all masked partial stores + lane shifts).
        left, right = x[..., :h], x[..., h:]
        return jax.nn.silu(left) * right

    rows = 1
    for d in orig_shape[:-1]:
        rows *= d
    x2d = x.reshape(rows, two_h)

    itemsize = jnp.dtype(x.dtype).itemsize
    # Sublane granule: 8 rows for 4-byte, 16 for 2-byte, 32 for 1-byte dtypes.
    granule = max(8, 32 // max(itemsize, 1))

    # ---- feature tile: widest multiple-of-128 divisor of H <= cap ----------
    tn = 128
    cand = (min(h, max_feature_tile) // 128) * 128
    while cand >= 128:
        if h % cand == 0:
            tn = cand
            break
        cand -= 128

    # ---- row tile: multiple of the sublane granule (or full extent) --------
    if rows <= granule:
        tr = rows  # full-extent row block for tiny inputs
    else:
        tr = max(granule, (min(tile_rows, rows) // granule) * granule)

    # ---- generation-aware VMEM budget ---------------------------------------
    # Working set: 2 inputs + 1 output, double-buffered => ~6 resident blocks.
    vmem_cap = _vmem_capacity_bytes()
    vmem_budget = min(48 * _MIB, vmem_cap // 3)
    while tr > granule and 6 * tr * tn * itemsize > vmem_budget:
        tr = max(granule, ((tr // 2) // granule) * granule)

    grid_r = pl.cdiv(rows, tr)
    grid_n = h // tn

    # Keep both of v7x's TensorCores busy for tiny shapes: >= 2 parallel steps.
    if grid_r * grid_n < 2:
        if tn % 256 == 0:
            tn //= 2
        elif tr >= 2 * granule:
            tr //= 2
        grid_r = pl.cdiv(rows, tr)
        grid_n = h // tn

    vmem_limit = max(32 * _MIB, min((vmem_cap * 3) // 4, vmem_budget + 32 * _MIB))

    right_block_off = h // tn  # block-index offset of the right half

    out2d = pl.pallas_call(
        _swiglu_kernel,
        out_shape=jax.ShapeDtypeStruct((rows, h), x.dtype),
        grid_spec=pltpu.PrefetchScalarGridSpec(
            num_scalar_prefetch=0,
            grid=(grid_r, grid_n),
            in_specs=[
                # Left half of x2d.
                pl.BlockSpec((tr, tn), lambda i, j: (i, j)),
                # Right half of the SAME array, offset by H (in blocks).
                pl.BlockSpec((tr, tn), lambda i, j: (i, j + right_block_off)),
            ],
            out_specs=pl.BlockSpec((tr, tn), lambda i, j: (i, j)),
        ),
        compiler_params=pltpu.CompilerParams(
            dimension_semantics=("parallel", "parallel"),
            vmem_limit_bytes=vmem_limit,
        ),
    )(x2d, x2d)

    return out2d.reshape(*orig_shape[:-1], h)


def swiglu_ref(x):
    h = x.shape[-1] // 2
    left, right = x[..., :h], x[..., h:]
    return jax.nn.silu(left) * right


if __name__ == "__main__":
    key = jax.random.PRNGKey(0)

    # 1) Main case: batch=2, seq=8, hidden(=2H)=256 -> H=128 (split path).
    x = jax.random.normal(key, (2, 8, 256), dtype=jnp.float32)
    out = jax.block_until_ready(swiglu(x))
    assert out.shape == (2, 8, 128), out.shape
    assert jnp.allclose(out, swiglu_ref(x), atol=1e-5, rtol=1e-5), "mismatch (main case)"

    # 2) Ragged row count (3*5=15 rows) -> masked writeback on last row block.
    k2 = jax.random.fold_in(key, 1)
    x2 = jax.random.normal(k2, (3, 5, 256), dtype=jnp.float32)
    out2 = jax.block_until_ready(swiglu(x2))
    assert out2.shape == (3, 5, 128), out2.shape
    assert jnp.allclose(out2, swiglu_ref(x2), atol=1e-5, rtol=1e-5), "mismatch (ragged rows)"

    # 3) bf16 input (16-row sublane granule, f32 in-kernel compute).
    k3 = jax.random.fold_in(key, 2)
    x3 = jax.random.normal(k3, (2, 8, 256), dtype=jnp.bfloat16)
    out3 = jax.block_until_ready(swiglu(x3))
    ref3 = swiglu_ref(x3.astype(jnp.float32)).astype(jnp.bfloat16)
    assert out3.shape == (2, 8, 128), out3.shape
    assert jnp.allclose(out3.astype(jnp.float32), ref3.astype(jnp.float32),
                        atol=2e-2, rtol=2e-2), "mismatch (bf16)"

    # 4) H not a multiple of 128 (2H=96 -> H=48): deferred to XLA per review.
    k4 = jax.random.fold_in(key, 3)
    x4 = jax.random.normal(k4, (2, 8, 96), dtype=jnp.float32)
    out4 = jax.block_until_ready(swiglu(x4))
    assert out4.shape == (2, 8, 48), out4.shape
    assert jnp.allclose(out4, swiglu_ref(x4), atol=1e-5, rtol=1e-5), "mismatch (XLA fallback)"

    print("KERNEL_OK")
</pallas_src>

<mosaic_0001>
module attributes {stable_mosaic.version = 11 : i64} {
  func.func @_swiglu_kernel(%arg0: i32, %arg1: i32, %arg2: memref<8x128xf32, #tpu.memory_space<vmem>>, %arg3: memref<8x128xf32, #tpu.memory_space<vmem>>, %arg4: memref<8x128xf32, #tpu.memory_space<vmem>>) attributes {dimension_semantics = [#tpu.dimension_semantics<parallel>, #tpu.dimension_semantics<parallel>], iteration_bounds = array<i64: 2, 1>, scalar_prefetch = 0 : i64, scratch_operands = 0 : i64, tpu.core_type = #tpu.core_type<tc>, window_params = [{transform_indices = @transform_0, window_bounds = array<i64: 8, 128>}, {transform_indices = @transform_1, window_bounds = array<i64: 8, 128>}, {transform_indices = @transform_2, window_bounds = array<i64: 8, 128>}]} {
    %c0 = arith.constant 0 : index
    %c0_0 = arith.constant 0 : index
    %0 = vector.load %arg2[%c0, %c0_0] : memref<8x128xf32, #tpu.memory_space<vmem>>, vector<8x128xf32>
    %c0_1 = arith.constant 0 : index
    %c0_2 = arith.constant 0 : index
    %1 = vector.load %arg3[%c0_1, %c0_2] : memref<8x128xf32, #tpu.memory_space<vmem>>, vector<8x128xf32>
    %cst = arith.constant 5.000000e-01 : f32
    %2 = vector.broadcast %cst : f32 to vector<8x128xf32>
    %3 = arith.mulf %2, %0 : vector<8x128xf32>
    %cst_3 = arith.constant 5.000000e-01 : f32
    %4 = vector.broadcast %cst_3 : f32 to vector<8x128xf32>
    %5 = arith.mulf %4, %0 : vector<8x128xf32>
    %6 = math.tanh %5 : vector<8x128xf32>
    %cst_4 = arith.constant 1.000000e+00 : f32
    %7 = vector.broadcast %cst_4 : f32 to vector<8x128xf32>
    %8 = arith.addf %7, %6 : vector<8x128xf32>
    %9 = arith.mulf %3, %8 : vector<8x128xf32>
    %10 = arith.mulf %9, %1 : vector<8x128xf32>
    %c0_5 = arith.constant 0 : index
    %c0_6 = arith.constant 0 : index
    %11 = vector.load %arg4[%c0_5, %c0_6] : memref<8x128xf32, #tpu.memory_space<vmem>>, vector<8x128xf32>
    tpu.vector_store %arg4[%c0_5, %c0_6], %10 {strides = array<i32>} : memref<8x128xf32, #tpu.memory_space<vmem>>, vector<8x128xf32>,
    return
  }
  func.func @transform_0(%arg0: i32, %arg1: i32) -> (i32, i32) {
    %c0_i32 = arith.constant 0 : i32
    return %arg0, %arg1 : i32, i32
  }
  func.func @transform_1(%arg0: i32, %arg1: i32) -> (i32, i32) {
    %c1_i32 = arith.constant 1 : i32
    %0 = arith.addi %arg1, %c1_i32 : i32
    %c0_i32 = arith.constant 0 : i32
    return %arg0, %0 : i32, i32
  }
  func.func @transform_2(%arg0: i32, %arg1: i32) -> (i32, i32) {
    %c0_i32 = arith.constant 0 : i32
    return %arg0, %arg1 : i32, i32
  }
}

</mosaic_0001>

<bundles_post_ra>
// kernel: tpu_custom_call.1
= control target key start
LH: loop header
LB: loop body
LE: loop exit
PB: predicated region body
PF: predicated region fallthrough
CT: control target
= control target key end

     0   :  { %7 = vsyncpa [#allocation3], 0  ;;  %s746_s0 = inlined_call_operand.hbm [shape: f32[16,256], index: 0, kind: input, shape index: {}]   ;;  %s747_s1 = inlined_call_operand.hbm [shape: f32[16,256], index: 1, kind: input, shape index: {}]   ;;  %s748_s2 = inlined_call_operand.hbm [shape: f32[16,128], index: 2, kind: output, shape index: {}]  }
   0x1   :  { %9 = vsyncpa [#allocation3 + $0x1], 0 }
   0x2   :  { %10 = vsyncpa [#allocation6], 0 }
   0x3   :  { %12 = vsyncpa [#allocation6 + $0x1], 0 }
   0x4   :  { %13 = vsyncpa [#allocation4], 0 }
   0x5   :  { %15 = vsyncpa [#allocation4 + $0x1], 0  ;;  %s610_s9 = smov 0   ;;  %s612_s10 = smov 0  }
   0x6   :  { %s614_s11 = smov 0   ;;  %s616_s12 = smov 0  }
   0x7   :  { %s618_s13 = smov 0   ;;  %s620_s14 = smov 0  }
   0x8 LB: > { %s358_s15 = sadd.s32 4294967295, %s593_s14   ;;  %s359_s16 = sadd.s32 4294967294, %s593_s14   ;;  %s593_s14 = sphi %s620_s14, %s21_s14   ;;  %s589_s13 = sphi %s618_s13, %s758_s13   ;;  %s585_s12 = sphi %s616_s12, %s757_s12   ;;  %s581_s11 = sphi %s614_s11, %s756_s11   ;;  %s577_s10 = sphi %s612_s10, %s755_s10   ;;  %s573_s9 = sphi %s610_s9, %s754_s9  }
   0x9   : > { %s33_s17 = sadd.s32 1, %s589_s13  ;;  %s42_s18 = sadd.s32 1, %s581_s11 }
   0xa   : > { %p35_p0 = scmp.ge.s32.totalorder %s33_s17, 2  ;;  %p49_p1 = scmp.ne.s32.totalorder %s581_s11, %s577_s10 }
   0xb   : > { %p50_p2 = scmp.eq.s32.totalorder %s593_s14, 0  ;;  %p55_p3 = scmp.ne.s32.totalorder %s577_s10, %s573_s9 }
   0xc   : > { %s760_s17 = smov (%p35_p0, %s33_s17), 0  ;;  %p56_p5 = scmp.eq.s32.totalorder %s358_s15, 0 }
   0xd   : > { %p651_p4 = por %p50_p2, %p49_p1  ;;  %s37_s20 = ssub.s32 %s589_s13, %s760_s17 }
   0xe   : > { %p111_p6 = scmp.eq.s32.totalorder %s358_s15, 1  ;;  %p40_p7 = scmp.eq.s32.totalorder %s37_s20, 0 }
   0xf   : > { %p657_p8 = por %p56_p5, %p55_p3  ;;  %p117_p10 = scmp.eq.s32.totalorder %s359_s16, 1 }
  0x10   : > { %p661_p9 = por %p111_p6, %p49_p1  ;;  %p361_p12 = scmp.ge.s32.totalorder %s593_s14, 2 }
  0x11   : > { %s666_s23 = scalar_select %p40_p7, %s581_s11, %s42_s18  }
  0x12   : > { %p668_p11 = por %p117_p10, %p55_p3  ;;  %p395_p13 = scmp.lt.s32.totalorder %s593_s14, 2 }
  0x13   : > { %s137_s25 = sand.u32 1, %s581_s11   ;;  %s376_s27 = sshll.u32 %s589_s13, 4 }
  0x14   : > { %s362_s26 = sshll.u32 %s137_s25, 3  ;;  %s147_s30 = scalar_lea.hbm %s746_s0, %s376_s27 }
  0x15   : > { %s141_s3 = scalar_lea.vmem [#allocation2], %s362_s26  ;;  %s149_s5 = sshll.u32 %s147_s30, 4  ;;  %s150_s5 = int_to_ptr.hbm [resolvable:$true] %s149_s5 }
  0x16   : > { %s151_s4 = sshll.u32 %s141_s3, 4  ;;  %p681_p0 = pnand %p395_p13, %p651_p4  ;;  %s152_s4 = int_to_ptr.vmem [resolvable:$true] %s151_s4 }
  0x17   : > { %p368_p1 = scmp.ge.s32.totalorder %s593_s14, 1  ;;  %p178_p2 = scmp.lt.s32.totalorder %s593_s14, 3 }
  0x18   : > { %s138_s7 = scalar_lea.sflag [#allocation3], %s137_s25  ;;  %s291_s16 = scalar_lea.hbm %s747_s1, %s376_s27 }
  0x19   : > { %387 = dma.hbm_to_vmem [thread:$0]  (!%p681_p0), %s150_s5, 128, %s152_s4, %s138_s7  }
  0x1a   : > { %p179_p3 = pnand %p368_p1, %p178_p2  ;;  %s162_s18 = scalar_lea.vmem [#allocation5], %s362_s26 }
  0x1b   : > { %s173_s20 = sshll.u32 %s162_s18, 4  ;;  %s292_s28 = scalar_lea.hbm %s291_s16, 8  ;;  %s174_s20 = int_to_ptr.vmem [resolvable:$true] %s173_s20 }
  0x1c   : > { %s171_s19 = sshll.u32 %s292_s28, 4  ;;  %s159_s29 = scalar_lea.sflag [#allocation6], %s137_s25  ;;  %s172_s19 = int_to_ptr.hbm [resolvable:$true] %s171_s19 }
  0x1d   : > { %390 = dma.hbm_to_vmem [thread:$0]  (!%p681_p0), %s172_s19, 128, %s174_s20, %s159_s29  }
  0x1e   : > { %182 = sbr.rel (%p179_p3) target bundleno = 57 (0x39), region = 28  ;;  %s695_s30 = sand.u32 (!%p179_p3), 1, %s577_s10  }
  0x1f   : > { %s369_s3 = sshll.u32 (!%p179_p3), %s695_s30, 3  ;;  %s185_s4 = scalar_lea.sflag (!%p179_p3), [#allocation3], %s695_s30 }
  0x20   : > { %s188_s5 = scalar_lea.vmem (!%p179_p3), [#allocation2], %s369_s3 }
  0x23   : > { %560 = dma.done.wait (%p657_p8), %s185_s4, 128  }
  0x24   : > { %562 = vsyncadd (%p657_p8), %s185_s4, 4294967168  ;;  %s195_s25 = scalar_lea.sflag [#allocation6], %s695_s30  ;;  %s198_s26 = scalar_lea.vmem [#allocation5], %s369_s3 }
  0x25   : > { %564 = dma.done.wait (%p657_p8), %s195_s25, 128  }
  0x26   : > { %566 = vsyncadd (%p657_p8), %s195_s25, 4294967168  ;;  %v226_v0 = vld [vmem:[%s188_s5] sm:$0xff]  ;;  %s373_s27 = sshll.u32 %s585_s12, 3  ;;  %v227_v4 = vld [vmem:[%s198_s26] sm:$0xff]  ;;  %s224_s15 = scalar_lea.vmem [#allocation7], %s369_s3 }
  0x27   : > { %v228_v1 = vmul.f32 0.5, %v226_v0  ;;  %s246_s8 = scalar_lea.hbm %s748_s2, %s373_s27  ;;  %s248_s16 = sshll.u32 %s224_s15, 4  ;;  %s249_s16 = int_to_ptr.vmem [resolvable:$true] %s248_s16 }
  0x28   : > { %s250_s18 = sshll.u32 %s246_s8, 4  ;;  %s235_s21 = scalar_lea.sflag [#allocation4], %s695_s30  ;;  %s251_s18 = int_to_ptr.hbm [resolvable:$true] %s250_s18 }
  0x29   : > { %445 = vtanh.f32 %v228_v1  ;;  %s521_s20 = sshra.s32 %s251_s18, 4  ;;  %s527_s29 = scalar_lea.hbm %s748_s2, 16  ;;  %s522_s20 = int_to_ptr.hbm [resolvable:$true] %s521_s20 }
  0x2a   : > { %s523_s12 = scalar_lea.hbm %s522_s20, 8  ;;  %p528_p7 = scmp.lt.s32.totalorder %s522_s20, %s748_s2 }
  0x2b   : > { %p524_p4 = scmp.ne.s32.totalorder %s522_s20, %s523_s12  ;;  %p529_p8 = scmp.lt.s32.totalorder %s527_s29, %s523_s12 }
  0x2d   : > { %p525_p5 = pnand %p524_p4, %p661_p9  ;;  %p530_p10 = por %p529_p8, %p528_p7 }
  0x2f   : > { %v446_v2 = vpop.eup %445  ;;  %p526_p6 = pneg %p525_p5 }
  0x30   : > { %v230_v3 = vadd.f32 1.0, %v446_v2 }
  0x31   : > { %p531_p13 = pnand %p530_p10, %p526_p6 }
  0x32   : > { %v231_v5 = vmul.f32 %v230_v3, %v228_v1 }
  0x34   : > { %v232_v6 = vmul.f32 %v231_v5, %v227_v4 }
  0x36   : > { %233 = vst [vmem:[%s224_s15] sm:$0xff] %v232_v6 }
  0x37   : > { %534 = shalt.err (!%p531_p13)
}
  0x38   : > { %382 = dma.vmem_to_hbm [thread:$0]  (%p661_p9), %s249_s16, 128, %s251_s18, %s235_s21  }
  0x39 PF: > { %s262_s30 = sand.u32 1, %s573_s9   ;;  %p392_p0 = pnand %p361_p12, %p668_p11 }
  0x3a   : > { %s263_s5 = scalar_lea.sflag [#allocation4], %s262_s30 }
  0x3b   : > { %p393_p1 = pneg %p392_p0 }
  0x3d   : > { %568 = dma.done.wait (%p393_p1), %s263_s5, 128  }
  0x3e   : > { %570 = vsyncadd (%p393_p1), %s263_s5, 4294967168  ;;  %s21_s14 = sadd.s32 1, %s593_s14   ;;  %s754_s9 = smov %s577_s10 }
  0x3f   : > { %p18_p2 = scmp.ge.s32.totalorder %s21_s14, 4   ;;  %s755_s10 = smov %s581_s11 }
  0x40   : > { %s756_s11 = smov %s666_s23  ;;  %s757_s12 = smov %s589_s13 }
  0x41   : > { %s758_s13 = smov %s760_s17  ;;  %20 = sbr.rel (!%p18_p2) target bundleno = 8 (0x8), region = 86 }
  0x46   :  { %269 = vsyncpa [#allocation3], 1 }
  0x47   :  { %271 = vsyncpa [#allocation3 + $0x1], 1 }
  0x48   :  { %272 = vsyncpa [#allocation6], 1 }
  0x49   :  { %274 = vsyncpa [#allocation6 + $0x1], 1 }
  0x4a   :  { %275 = vsyncpa [#allocation4], 1 }
  0x4b   :  { %277 = vsyncpa [#allocation4 + $0x1], 1 }

</bundles_post_ra>
